<compile_context>
chip_gen: v7x
topology: tpu7x:2x2x1
jax: 0.10.0
libtpu: 0.0.40
codegen_flags: <defaults>
</compile_context>

<pallas_src>
import jax
import jax.numpy as jnp
from jax.experimental import pallas as pl
from jax.experimental.pallas import tpu as pltpu


def _round_up(x, m):
    return ((x + m - 1) // m) * m


def _vmem_capacity_bytes():
    """Physical VMEM per TensorCore; conservative fallback if the query fails."""
    try:
        info = pltpu.get_tpu_info()
        cap = int(getattr(info, "vmem_capacity_bytes", 0) or 0)
        if cap > 0:
            return cap
    except Exception:
        pass
    return 64 << 20  # v7x per-TC size: the smallest across v5e/v6e/v7x


def _elu(y):
    # ELU (alpha=1).  exp(min(y,0)) keeps the discarded branch finite (no inf);
    # for y <= 0, exp(y) - 1.0 is within ~6e-8 absolute of expm1(y), well below
    # the bf16-input noise floor.
    neg = jnp.exp(jnp.minimum(y, 0.0)) - 1.0
    return jnp.where(y > 0, y, neg)


def _egnn_kernel(e_ref, xw_ref, o_ref):
    # Single K tile: (block_rows, N) @ (N, out_p), f32 accumulation on the MXU.
    y = jnp.dot(e_ref[...], xw_ref[...], preferred_element_type=jnp.float32)
    o_ref[...] = _elu(y).astype(o_ref.dtype)


def _egnn_kernel_kblocked(e_ref, xw_ref, o_ref, acc_ref):
    # K-blocked: accumulate (block_rows, tk) @ (tk, out_p) into f32 scratch.
    k = pl.program_id(1)

    @pl.when(k == 0)
    def _():
        acc_ref[...] = jnp.zeros_like(acc_ref)

    acc_ref[...] += jnp.dot(e_ref[...], xw_ref[...],
                            preferred_element_type=jnp.float32)

    @pl.when(k == pl.num_programs(1) - 1)
    def _():
        o_ref[...] = _elu(acc_ref[...]).astype(o_ref.dtype)


def egnn_conv(E, X, W, *, block_rows=None, block_k=None,
              compute_dtype=jnp.bfloat16):
    """E: (M, N, P), X: (N, in_dim), W: (in_dim, out_dim) (== lin1.weight.T).
    Returns f32 (M, P*out_dim) == ELU(einsum('ijp,jk->ipk', E, X @ W).view(M, -1))."""
    M, N, P = E.shape
    in_dim, out_dim = W.shape
    assert X.shape == (N, in_dim)

    # ---- plain-JAX glue: tiny lin1 + layout-only transpose (fused by XLA) ----
    XW = jnp.dot(X, W, preferred_element_type=jnp.float32).astype(compute_dtype)
    # Contraction axis (N) last; rows = (i, p) row-major so the final reshape to
    # (M, P*out_dim) matches torch's .view(M, -1).
    E2d = jnp.transpose(E.astype(compute_dtype), (0, 2, 1)).reshape(M * P, N)

    rows = M * P
    eb = jnp.dtype(compute_dtype).itemsize

    # Lane-dense output when out_dim >= 128; for small out_dim keep the native
    # width (full-dim block, masked store) instead of inflating write traffic.
    out_p = _round_up(out_dim, 128) if out_dim >= 128 else out_dim
    if out_p != out_dim:
        XW = jnp.pad(XW, ((0, 0), (0, out_p - out_dim)))  # ELU(0)=0, sliced later

    # ---- per-chip tile sizing from the queried VMEM capacity -----------------
    cap = _vmem_capacity_bytes()
    budget = int(cap * 0.8)  # ~51 MiB on v7x, ~102 MiB on v5e/v6e

    def pick_rows(tk_):
        # Double-buffered bf16 E tile + double-buffered f32 out tile + f32 acc.
        per_row = 2 * tk_ * eb + 2 * out_p * 4 + out_p * 4
        fixed = 2 * tk_ * out_p * eb  # double-buffered XW tile
        avail = budget - fixed
        if avail <= 0:
            return 0
        blk = int(avail // per_row)
        blk = min(blk, 2048, _round_up(rows, 8))
        return (blk // 8) * 8

    def norm_tk(t):
        if t >= N:
            return N
        t = _round_up(t, 128)
        return N if t >= N else t

    if block_k is not None:
        tk = norm_tk(int(block_k))
    else:
        if N <= 2048:
            tk = N
        else:
            n_chunks = -(-N // 2048)                 # balanced K tiles, 128-aligned
            tk = norm_tk(-(-N // n_chunks))
        while tk > 128 and pick_rows(tk) < 8:        # shrink tk if VMEM-starved
            tk = norm_tk(max(128, tk // 2))

    if block_rows is not None:
        block = min(int(block_rows), _round_up(rows, 8))
    else:
        block = pick_rows(tk)
    block = max(8, (block // 8) * 8)

    # Fold any K padding into the existing transpose/cast pre-pass (zeros
    # contribute 0 to the matmul, so this is exact).
    n_pad = N if tk == N else _round_up(N, tk)
    if n_pad != N:
        E2d = jnp.pad(E2d, ((0, 0), (0, n_pad - N)))
        XW = jnp.pad(XW, ((0, n_pad - N), (0, 0)))
    n_k = n_pad // tk
    n_rb = pl.cdiv(rows, block)  # ragged row tail handled by masked partial block

    need = (2 * block * tk * eb + 2 * tk * out_p * eb
            + 2 * block * out_p * 4 + (block * out_p * 4 if n_k > 1 else 0))
    vmem_limit = int(min(max(need + (4 << 20), 32 << 20), budget))
    vmem_limit = max(vmem_limit, min(need + (1 << 20), cap))

    cost = pl.CostEstimate(
        flops=2 * rows * n_pad * out_p,
        transcendentals=rows * out_p,
        bytes_accessed=rows * n_pad * eb + n_pad * out_p * eb + rows * out_p * 4,
    )

    out_shape = jax.ShapeDtypeStruct((rows, out_p), jnp.float32)

    if n_k == 1:
        out2d = pl.pallas_call(
            _egnn_kernel,
            out_shape=out_shape,
            grid_spec=pltpu.PrefetchScalarGridSpec(
                num_scalar_prefetch=0,
                grid=(n_rb,),
                in_specs=[
                    pl.BlockSpec((block, n_pad), lambda i: (i, 0)),   # E2d rows
                    pl.BlockSpec((n_pad, out_p), lambda i: (0, 0)),   # XW resident
                ],
                out_specs=pl.BlockSpec((block, out_p), lambda i: (i, 0)),
            ),
            compiler_params=pltpu.CompilerParams(
                dimension_semantics=("parallel",),
                vmem_limit_bytes=vmem_limit,
            ),
            cost_estimate=cost,
        )(E2d, XW)
    else:
        out2d = pl.pallas_call(
            _egnn_kernel_kblocked,
            out_shape=out_shape,
            grid_spec=pltpu.PrefetchScalarGridSpec(
                num_scalar_prefetch=0,
                grid=(n_rb, n_k),
                in_specs=[
                    pl.BlockSpec((block, tk), lambda i, k: (i, k)),   # E2d tile
                    pl.BlockSpec((tk, out_p), lambda i, k: (k, 0)),   # XW K-stream
                ],
                out_specs=pl.BlockSpec((block, out_p), lambda i, k: (i, 0)),
                scratch_shapes=[pltpu.VMEM((block, out_p), jnp.float32)],
            ),
            compiler_params=pltpu.CompilerParams(
                dimension_semantics=("parallel", "arbitrary"),
                vmem_limit_bytes=vmem_limit,
            ),
            cost_estimate=cost,
        )(E2d, XW)

    if out_p != out_dim:
        out2d = out2d[:, :out_dim]
    return out2d.reshape(M, P * out_dim)


if __name__ == "__main__":
    def reference_bf16(E, X, W):
        # Same bf16-rounded operands, f32 math (matches kernel numerics).
        Xw = (X @ W).astype(jnp.bfloat16).astype(jnp.float32)
        e2 = jnp.transpose(E.astype(jnp.bfloat16), (0, 2, 1)).astype(jnp.float32)
        y = jnp.einsum("ipj,jk->ipk", e2, Xw).reshape(E.shape[0], -1)
        return jnp.where(y > 0, y, jnp.expm1(y))

    def reference_f32(E, X, W):
        # Pure-f32 torch-equivalent forward (loose tol: bf16 MXU inputs).
        y = jnp.einsum("ijp,jk->ipk", E, X @ W).reshape(E.shape[0], -1)
        return jnp.where(y > 0, y, jnp.expm1(y))

    # Case 1: single K tile, lane-dense out_dim=128.
    k1, k2, k3 = jax.random.split(jax.random.PRNGKey(0), 3)
    M, N, P, in_dim, out_dim = 8, 16, 4, 32, 128
    X = jax.random.normal(k1, (N, in_dim), dtype=jnp.float32)
    E = jax.random.normal(k2, (M, N, P), dtype=jnp.float32)
    W = 0.1 * jax.random.normal(k3, (in_dim, out_dim), dtype=jnp.float32)  # lin1.weight.T
    out = jax.block_until_ready(egnn_conv(E, X, W))
    assert out.shape == (M, P * out_dim)
    assert jnp.allclose(out, reference_bf16(E, X, W), atol=1e-3, rtol=1e-3)
    assert jnp.allclose(out, reference_f32(E, X, W), atol=5e-2, rtol=5e-2)

    # Case 2: forces the K-blocked accumulator path (N=300 padded to 384, 3 K
    # tiles) and the small-out_dim (no lane padding, masked store) path.
    k4, k5, k6 = jax.random.split(jax.random.PRNGKey(0), 3)
    M2, N2, P2, in2, od2 = 4, 300, 2, 16, 64
    X2 = jax.random.normal(k4, (N2, in2), dtype=jnp.float32)
    E2 = jax.random.normal(k5, (M2, N2, P2), dtype=jnp.float32)
    W2 = 0.1 * jax.random.normal(k6, (in2, od2), dtype=jnp.float32)
    out2 = jax.block_until_ready(egnn_conv(E2, X2, W2, block_k=128))
    assert out2.shape == (M2, P2 * od2)
    assert jnp.allclose(out2, reference_bf16(E2, X2, W2), atol=1e-3, rtol=1e-3)
    assert jnp.allclose(out2, reference_f32(E2, X2, W2), atol=5e-2, rtol=5e-2)

    print("KERNEL_OK")
</pallas_src>

<mosaic_0001>
module attributes {stable_mosaic.version = 11 : i64} {
  func.func @_egnn_kernel(%arg0: i32, %arg1: memref<32x16xbf16, #tpu.memory_space<vmem>>, %arg2: memref<16x128xbf16, #tpu.memory_space<vmem>>, %arg3: memref<32x128xf32, #tpu.memory_space<vmem>>) attributes {dimension_semantics = [#tpu.dimension_semantics<parallel>], iteration_bounds = array<i64: 1>, scalar_prefetch = 0 : i64, scratch_operands = 0 : i64, tpu.core_type = #tpu.core_type<tc>, window_params = [{transform_indices = @transform_0, window_bounds = array<i64: 32, 16>}, {pipeline_mode = #tpu.pipeline_mode<synchronous>, transform_indices = @transform_1, window_bounds = array<i64: 16, 128>}, {transform_indices = @transform_2, window_bounds = array<i64: 32, 128>}]} {
    %c0 = arith.constant 0 : index
    %c0_0 = arith.constant 0 : index
    %0 = vector.load %arg1[%c0, %c0_0] : memref<32x16xbf16, #tpu.memory_space<vmem>>, vector<32x16xbf16>
    %c0_1 = arith.constant 0 : index
    %c0_2 = arith.constant 0 : index
    %1 = vector.load %arg2[%c0_1, %c0_2] : memref<16x128xbf16, #tpu.memory_space<vmem>>, vector<16x128xbf16>
    %cst = arith.constant dense<0.000000e+00> : vector<32x128xf32>
    %2 = tpu.matmul %0, %1, %cst {dimension_numbers = #tpu.dot_dimension_numbers<[1], [0], [0], [1], [0, 0, 1, 1], [], []>} : vector<32x16xbf16>, vector<16x128xbf16>, vector<32x128xf32> -> vector<32x128xf32>
    %cst_3 = arith.constant 0.000000e+00 : f32
    %3 = vector.broadcast %cst_3 : f32 to vector<32x128xf32>
    %4 = arith.minimumf %2, %3 : vector<32x128xf32>
    %5 = math.exp %4 : vector<32x128xf32>
    %cst_4 = arith.constant 1.000000e+00 : f32
    %6 = vector.broadcast %cst_4 : f32 to vector<32x128xf32>
    %7 = arith.subf %5, %6 : vector<32x128xf32>
    %cst_5 = arith.constant 0.000000e+00 : f32
    %8 = vector.broadcast %cst_5 : f32 to vector<32x128xf32>
    %9 = arith.cmpf ogt, %2, %8 : vector<32x128xf32>
    %10 = arith.select %9, %2, %7 : vector<32x128xi1>, vector<32x128xf32>
    %c0_6 = arith.constant 0 : index
    %c0_7 = arith.constant 0 : index
    %11 = vector.load %arg3[%c0_6, %c0_7] : memref<32x128xf32, #tpu.memory_space<vmem>>, vector<32x128xf32>
    tpu.vector_store %arg3[%c0_6, %c0_7], %10 {strides = array<i32>} : memref<32x128xf32, #tpu.memory_space<vmem>>, vector<32x128xf32>,
    return
  }
  func.func @transform_0(%arg0: i32) -> (i32, i32) {
    %c0_i32 = arith.constant 0 : i32
    %c0_i32_0 = arith.constant 0 : i32
    return %arg0, %c0_i32 : i32, i32
  }
  func.func @transform_1(%arg0: i32) -> (i32, i32) {
    %c0_i32 = arith.constant 0 : i32
    %c0_i32_0 = arith.constant 0 : i32
    %c0_i32_1 = arith.constant 0 : i32
    return %c0_i32, %c0_i32_0 : i32, i32
  }
  func.func @transform_2(%arg0: i32) -> (i32, i32) {
    %c0_i32 = arith.constant 0 : i32
    %c0_i32_0 = arith.constant 0 : i32
    return %arg0, %c0_i32 : i32, i32
  }
}

</mosaic_0001>

<bundles_post_ra>
// kernel: tpu_custom_call.1
= control target key start
LH: loop header
LB: loop body
LE: loop exit
PB: predicated region body
PF: predicated region fallthrough
CT: control target
= control target key end

     0   :  { %vm35_vm0 = vcmask 130048   ;;  %s230_s0 = inlined_call_operand.vmem [shape: bf16[32,16], index: 0, kind: input, shape index: {}]   ;;  %s231_s1 = inlined_call_operand.vmem [shape: bf16[16,128], index: 1, kind: input, shape index: {}]   ;;  %s232_s2 = inlined_call_operand.hbm [shape: f32[32,128], index: 2, kind: output, shape index: {}]  }
   0x1   :  { %v156_v0 = vld [vmem:[%s231_s1] sm:$0xff]   ;;  %v158_v2 = vld [vmem:[%s230_s0 + $0x8] sm:$0xff]  }
   0x2   :  { %v157_v1 = vld [vmem:[%s230_s0] sm:$0xff]   ;;  %147 = vmatprep.subr.bf16.mxu0 %v156_v0 }
   0x3   :  { %148 = vmatpush3.bf16.msra.mxu0 %v156_v0  ;;  %149 = vmatprep.mubr.msk.bf16.mxu0 %vm35_vm0, %v157_v1 }
   0x4   :  { %7 = vsyncpa [#allocation3], 0  ;;  %s191_s0 = smov [#allocation2]  }
   0x5   :  { %s124_s1 = sshll.u32 %s191_s0, 4  ;;  %s125_s1 = int_to_ptr.vmem [resolvable:$true] %s124_s1 }
   0x6   :  { %150 = vmatmul.mubr.msk.bf16.vlgmr.msra.gmra.mrb[0].mxu0 %vm35_vm0, %v158_v2  ;;  %s167_s15 = scalar_lea.vmem %s125_s1, 512  ;;  %p172_p1 = scmp.lt.s32.totalorder %s125_s1, %s125_s1 }
   0x7   :  { %p168_p0 = scmp.ne.s32.totalorder %s125_s1, %s167_s15  ;;  %p173_p2 = scmp.lt.s32.totalorder %s167_s15, %s167_s15 }
   0x9   :  { %p174_p3 = por %p173_p2, %p172_p1 }
   0xb   :  { %p175_p4 = pnand %p174_p3, %p168_p0 }
  0xd9   :  { %v151_v3 = vpop.f32.mrb[0].mxu0 }
  0xda   :  { %v93_v4 = vmin.f32 %v151_v3, 0.0  ;;  %v76_v5 = vpop.f32.mrb[1].mxu0  ;;  %vm109_vm1 = vcmp.gt.f32.partialorder %v151_v3, 0.0 }
  0xdb   :  { %v91_v6 = vmin.f32 %v76_v5, 0.0  ;;  %v152_v7 = vpop.f32.mrb[2].mxu0  ;;  %vm107_vm2 = vcmp.gt.f32.partialorder %v76_v5, 0.0 }
  0xdc   :  { %v99_v8 = vmul.f32 1.442695, %v93_v4  ;;  %v94_v9 = vmin.f32 %v152_v7, 0.0  ;;  %v79_v10 = vpop.f32.mrb[3].mxu0  ;;  %vm110_vm3 = vcmp.gt.f32.partialorder %v152_v7, 0.0 }
  0xdd   :  { %v95_v11 = vmul.f32 1.442695, %v91_v6  ;;  %v92_v12 = vmin.f32 %v79_v10, 0.0  ;;  %vm108_vm4 = vcmp.gt.f32.partialorder %v79_v10, 0.0 }
  0xde   :  { %159 = vpow2.f32 %v99_v8  ;;  %v101_v13 = vmul.f32 1.442695, %v94_v9 }
  0xdf   :  { %161 = vpow2.f32 %v95_v11  ;;  %v97_v14 = vmul.f32 1.442695, %v92_v12 }
  0xe0   :  { %163 = vpow2.f32 %v101_v13 }
  0xe1   :  { %165 = vpow2.f32 %v97_v14 }
  0xe8   :  { %v160_v15 = vpop.eup %159 }
  0xe9   :  { %v162_v16 = vpop.eup %161  ;;  %v142_v17 = vadd.f32 -1.0, %v160_v15 }
  0xea   :  { %v164_v18 = vpop.eup %163  ;;  %v140_v19 = vadd.f32 -1.0, %v162_v16 }
  0xeb   :  { %v166_v20 = vpop.eup %165  ;;  %v113_v21 = vsel %vm109_vm1, %v151_v3, %v142_v17  ;;  %v143_v22 = vadd.f32 -1.0, %v164_v18 }
  0xec   :  { %117 = vst [vmem:[#allocation2 + $0x10] sm:$0xff] %v113_v21  ;;  %v111_v23 = vsel %vm107_vm2, %v76_v5, %v140_v19  ;;  %v141_v24 = vadd.f32 -1.0, %v166_v20 }
  0xed   :  { %115 = vst [vmem:[#allocation2] sm:$0xff] %v111_v23  ;;  %v114_v25 = vsel %vm110_vm3, %v152_v7, %v143_v22 }
  0xee   :  { %118 = vst [vmem:[#allocation2 + $0x18] sm:$0xff] %v114_v25  ;;  %v112_v26 = vsel %vm108_vm4, %v79_v10, %v141_v24 }
  0xef   :  { %116 = vst [vmem:[#allocation2 + $0x8] sm:$0xff] %v112_v26 }
  0xf0   :  { %178 = shalt.err (!%p175_p4)
}
  0xf1   :  { %s179_s18 = scalar_lea.hbm %s232_s2, 512 }
  0xf2   :  { %p180_p5 = scmp.ne.s32.totalorder %s232_s2, %s179_s18  ;;  %p183_p6 = scmp.lt.u32.totalorder %s179_s18, %s232_s2 }
  0xf4   :  { %p185_p7 = pnand %p183_p6, %p180_p5 }
  0xf6   :  { %188 = shalt.err (!%p185_p7)
}
  0xf7   :  { %s192_s23 = smov 128   ;;  %s193_s24 = smov 8  }
  0xf8   :  { %130 = dma.vmem_to_hbm [thread:$0]  %s125_s1, 512, %s232_s2, [#allocation3], %s192_s23, %s192_s23, %s193_s24  }
  0xf9   :  { %189 = dma.done.wait [#allocation3], 512  }
  0xfa   :  { %190 = vsyncadd [#allocation3], 4294966784 }
  0xfb   :  { %134 = vsyncpa [#allocation3], 1 }

</bundles_post_ra>
